<compile_context>
chip_gen: v7x
topology: tpu7x:2x2x1
jax: 0.10.0
libtpu: 0.0.40
codegen_flags: <defaults>
</compile_context>

<pallas_src>
import jax
import jax.numpy as jnp
from jax.experimental import pallas as pl
from jax.experimental.pallas import tpu as pltpu

_LANE = 128
_SUBLANE = 8


def _round_up(n, m):
    return ((n + m - 1) // m) * m


# ----------------------------- kernels ---------------------------------------


def ffn_kernel_resident(x_ref, w1_ref, b1_ref, w2_ref, b2_ref, o_ref):
    """k_tiles == 1: whole d_ff resident in VMEM; single fused pass, no scratch."""
    h = jnp.dot(x_ref[...], w1_ref[...], preferred_element_type=jnp.float32)
    h = jnp.maximum(h + b1_ref[...].astype(jnp.float32), 0.0)
    # TODO(synk): nn.Dropout(p=0.3) — identity (inference / eval mode).
    out = jnp.dot(h.astype(w2_ref.dtype), w2_ref[...],
                  preferred_element_type=jnp.float32)
    o_ref[...] = (out + b2_ref[...].astype(jnp.float32)).astype(o_ref.dtype)


def ffn_kernel_chunked(x_ref, w1_ref, b1_ref, w2_ref, b2_ref, o_ref, acc_ref):
    """k_tiles > 1: d_ff streamed in TF-wide chunks, f32 accumulator in VMEM."""
    k = pl.program_id(1)

    # First matmul on the current d_ff chunk + its bias slice, fused ReLU.
    h = jnp.dot(x_ref[...], w1_ref[...], preferred_element_type=jnp.float32)
    h = jnp.maximum(h + b1_ref[...].astype(jnp.float32), 0.0)
    # TODO(synk): nn.Dropout(p=0.3) — identity (inference / eval mode).

    # Second matmul: this chunk's contribution to the output tile (f32).
    contrib = jnp.dot(h.astype(w2_ref.dtype), w2_ref[...],
                      preferred_element_type=jnp.float32)

    @pl.when(k == 0)
    def _():
        # First chunk: assign (skips a full (TM, d_model) zero-fill + add pass).
        acc_ref[...] = contrib

    @pl.when(k > 0)
    def _():
        acc_ref[...] += contrib

    @pl.when(k == pl.num_programs(1) - 1)
    def _():
        # b2 added exactly once, at the final chunk.
        o_ref[...] = (acc_ref[...] + b2_ref[...].astype(jnp.float32)).astype(o_ref.dtype)


# ------------------------- VMEM budgeting / tiling ----------------------------


def _vmem_need(TM, TF, d_model, x_b, w_b, o_b, chunked):
    """Conservative VMEM estimate: every BlockSpec operand double-buffered, plus the
    in-kernel (TM, TF) f32 intermediate h (and its narrow cast copy), plus the f32
    accumulator scratch when chunking d_ff."""
    need = 2 * TM * d_model * x_b            # x tile (double-buffered)
    need += 2 * d_model * TF * w_b           # w1 chunk
    need += 2 * TF * d_model * w_b           # w2 chunk
    need += 2 * (TF + d_model) * w_b         # biases (tiny)
    need += 2 * TM * d_model * o_b           # output tile
    need += TM * TF * 4                      # h intermediate (f32)
    if w_b < 4:
        need += TM * TF * w_b                # h cast copy fed to the 2nd matmul
    if chunked:
        need += TM * d_model * 4             # f32 accumulator scratch
    return need


def _select_tiles(M, d_model, d_ff, x_b, w_b, o_b, budget, tm_target, max_tf):
    """Pick (TM, TF, d_ff_padded); TF always divides d_ff_padded."""
    TM = M if M <= tm_target else tm_target

    tf_cap = d_ff if max_tf is None else max(1, min(d_ff, max_tf))

    # Fast path: whole d_ff resident (k_tiles == 1) -> weights DMA'd exactly once.
    if tf_cap == d_ff and _vmem_need(TM, d_ff, d_model, x_b, w_b, o_b, False) <= budget:
        return TM, d_ff, d_ff

    # Chunked path: largest multiple-of-128 TF (within cap) that fits the budget.
    tf_hi = max(_LANE, tf_cap - tf_cap % _LANE)
    while tf_hi > _LANE and _vmem_need(TM, tf_hi, d_model, x_b, w_b, o_b, True) > budget:
        tf_hi -= _LANE
    # If even the minimum chunk doesn't fit, shrink the row tile (keep >= 8).
    while TM > _SUBLANE and _vmem_need(TM, tf_hi, d_model, x_b, w_b, o_b, True) > budget:
        TM = max(_SUBLANE, (TM // 2) - (TM // 2) % _SUBLANE)

    # Prefer a clean divisor of d_ff (no padding) ...
    for tf in range(tf_hi, _LANE - 1, -_LANE):
        if d_ff % tf == 0:
            return TM, tf, d_ff
    # ... otherwise zero-pad d_ff up to a multiple of the bounded TF (padded
    # w1 columns / b1 entries / w2 rows contribute exactly 0).
    return TM, tf_hi, _round_up(d_ff, tf_hi)


# ------------------------------- wrapper --------------------------------------


def feed_forward(x, w1, b1, w2, b2, *, compute_dtype=None, tm=None, max_tf=None):
    """x: (B, S, d_model). w1: (d_model, d_ff), b1: (1, d_ff),
    w2: (d_ff, d_model), b2: (1, d_model). Returns (B, S, d_model) in x's dtype.

    compute_dtype: optional (e.g. jnp.bfloat16) — cast x/w1/w2 for full MXU rate;
    accumulation stays f32.  tm / max_tf: optional tile-size overrides (testing)."""
    B, S, d_model = x.shape
    d_ff = w1.shape[1]
    M = B * S
    out_dtype = x.dtype

    if compute_dtype is not None:
        x = x.astype(compute_dtype)
        w1 = w1.astype(compute_dtype)
        w2 = w2.astype(compute_dtype)

    x2d = x.reshape(M, d_model)
    x_b = jnp.dtype(x.dtype).itemsize
    w_b = jnp.dtype(w1.dtype).itemsize
    o_b = jnp.dtype(out_dtype).itemsize

    # Generation-aware VMEM budget and row-tile target.
    try:
        vmem_cap = int(pltpu.get_tpu_info().vmem_capacity_bytes)
    except Exception:
        vmem_cap = 64 * 1024 * 1024          # conservative: fits every generation
    vmem_limit = int(vmem_cap * 0.85)        # ~108 MiB on v5e/v6e, ~54 MiB on v7x
    budget = int(vmem_limit * 0.9)           # headroom for compiler-internal scratch

    if tm is None:
        # v7x (64 MiB/TC, 3.2 TB/s HBM): TM=512 is already past the MXU crossover.
        # v5e/v6e (128 MiB): TM=1024 (v6e bf16 roofline crossover ~640 rows).
        tm = 512 if vmem_cap <= 64 * 1024 * 1024 else 1024
    tm = max(_SUBLANE, tm - tm % _SUBLANE)

    TM, TF, d_ff_pad = _select_tiles(M, d_model, d_ff, x_b, w_b, o_b, budget, tm, max_tf)

    if d_ff_pad != d_ff:
        pad = d_ff_pad - d_ff
        w1 = jnp.pad(w1, ((0, 0), (0, pad)))
        b1 = jnp.pad(b1, ((0, 0), (0, pad)))
        w2 = jnp.pad(w2, ((0, pad), (0, 0)))

    m_tiles = pl.cdiv(M, TM)
    k_tiles = d_ff_pad // TF

    # Accurate DMA-volume hint: with k innermost, weights are re-read once per row
    # tile when k_tiles > 1; with full residency they are read exactly once.
    weight_reads = 1 if k_tiles == 1 else m_tiles
    cost = pl.CostEstimate(
        flops=4 * M * d_model * d_ff_pad,
        transcendentals=0,
        bytes_accessed=int(x2d.size * x_b
                           + weight_reads * (w1.size + w2.size) * w_b
                           + (b1.size + b2.size) * jnp.dtype(b1.dtype).itemsize
                           + M * d_model * o_b),
    )

    compiler_params = pltpu.CompilerParams(
        dimension_semantics=("parallel",) if k_tiles == 1 else ("parallel", "arbitrary"),
        vmem_limit_bytes=vmem_limit,
    )

    if k_tiles == 1:
        # Weight-resident fast path: weights/bias blocks constant across the grid.
        grid_spec = pltpu.PrefetchScalarGridSpec(
            num_scalar_prefetch=0,
            grid=(m_tiles,),
            in_specs=[
                pl.BlockSpec((TM, d_model), lambda i: (i, 0)),   # activation row tile
                pl.BlockSpec((d_model, TF), lambda i: (0, 0)),   # w1: DMA'd once
                pl.BlockSpec((1, TF),       lambda i: (0, 0)),   # b1
                pl.BlockSpec((TF, d_model), lambda i: (0, 0)),   # w2: DMA'd once
                pl.BlockSpec((1, d_model),  lambda i: (0, 0)),   # b2
            ],
            out_specs=pl.BlockSpec((TM, d_model), lambda i: (i, 0)),
        )
        kernel = ffn_kernel_resident
    else:
        grid_spec = pltpu.PrefetchScalarGridSpec(
            num_scalar_prefetch=0,
            grid=(m_tiles, k_tiles),
            in_specs=[
                pl.BlockSpec((TM, d_model), lambda i, k: (i, 0)),  # constant across k
                pl.BlockSpec((d_model, TF), lambda i, k: (0, k)),  # w1 chunk
                pl.BlockSpec((1, TF),       lambda i, k: (0, k)),  # b1 chunk
                pl.BlockSpec((TF, d_model), lambda i, k: (k, 0)),  # w2 chunk
                pl.BlockSpec((1, d_model),  lambda i, k: (0, 0)),  # b2
            ],
            # Same block index across k -> output tile resident, written at k==last.
            out_specs=pl.BlockSpec((TM, d_model), lambda i, k: (i, 0)),
            scratch_shapes=[pltpu.VMEM((TM, d_model), jnp.float32)],
        )
        kernel = ffn_kernel_chunked

    out2d = pl.pallas_call(
        kernel,
        out_shape=jax.ShapeDtypeStruct((M, d_model), out_dtype),
        grid_spec=grid_spec,
        compiler_params=compiler_params,
        cost_estimate=cost,
    )(x2d, w1, b1, w2, b2)
    return out2d.reshape(B, S, d_model)


def _reference(x, w1, b1, w2, b2):
    B, S, d_model = x.shape
    h = jnp.maximum(x.reshape(-1, d_model) @ w1 + b1, 0.0)
    return (h @ w2 + b2).reshape(B, S, d_model)


if __name__ == "__main__":
    key = jax.random.PRNGKey(0)
    keys = jax.random.split(key, 12)

    B, S, d_model, d_ff = 2, 8, 32, 128

    def make_params(k0, k1, k2, k3, dm, df):
        # nn.Linear: weight ~ normal(std=0.001); bias ~ U(-1/sqrt(fan_in), 1/sqrt(fan_in))
        w1 = 0.001 * jax.random.normal(k0, (dm, df), dtype=jnp.float32)
        b1 = jax.random.uniform(k1, (1, df), dtype=jnp.float32,
                                minval=-1.0 / jnp.sqrt(dm), maxval=1.0 / jnp.sqrt(dm))
        w2 = 0.001 * jax.random.normal(k2, (df, dm), dtype=jnp.float32)
        b2 = jax.random.uniform(k3, (1, dm), dtype=jnp.float32,
                                minval=-1.0 / jnp.sqrt(df), maxval=1.0 / jnp.sqrt(df))
        return w1, b1, w2, b2

    x = jax.random.normal(keys[0], (B, S, d_model), dtype=jnp.float32)

    # ---- Test 1: fast path (whole d_ff resident, single fused pass) ----
    w1, b1, w2, b2 = make_params(keys[1], keys[2], keys[3], keys[4], d_model, d_ff)
    out = jax.block_until_ready(feed_forward(x, w1, b1, w2, b2))
    ref = _reference(x, w1, b1, w2, b2)
    assert out.shape == (B, S, d_model)
    assert jnp.allclose(out, ref, atol=1e-5, rtol=1e-5)

    # ---- Test 2: forced chunked path (2 row tiles x 2 d_ff chunks) exercising the
    #              accumulator assign-at-k==0 / finalize-at-k==last path ----
    w1b, b1b, w2b, b2b = make_params(keys[5], keys[6], keys[7], keys[8], d_model, 256)
    out2 = jax.block_until_ready(feed_forward(x, w1b, b1b, w2b, b2b, tm=8, max_tf=128))
    ref2 = _reference(x, w1b, b1b, w2b, b2b)
    assert jnp.allclose(out2, ref2, atol=1e-5, rtol=1e-5)

    # ---- Test 3: ragged d_ff (320) -> zero-padded to 384 (3 x 128 chunks) ----
    w1c, b1c, w2c, b2c = make_params(keys[9], keys[10], keys[11], keys[4], d_model, 320)
    out3 = jax.block_until_ready(feed_forward(x, w1c, b1c, w2c, b2c, tm=8, max_tf=128))
    ref3 = _reference(x, w1c, b1c, w2c, b2c)
    assert jnp.allclose(out3, ref3, atol=1e-5, rtol=1e-5)

    # ---- Test 4: bf16 compute path (full MXU rate on v6e/v7x; f32 accumulation) ----
    out4 = jax.block_until_ready(feed_forward(x, w1, b1, w2, b2,
                                              compute_dtype=jnp.bfloat16))
    assert jnp.allclose(out4, ref, atol=3e-2, rtol=3e-2)

    print("KERNEL_OK")
</pallas_src>

<mosaic_0001>
module attributes {stable_mosaic.version = 11 : i64} {
  func.func @ffn_kernel_resident(%arg0: i32, %arg1: memref<16x32xf32, #tpu.memory_space<vmem>>, %arg2: memref<32x128xf32, #tpu.memory_space<vmem>>, %arg3: memref<1x128xf32, #tpu.memory_space<vmem>>, %arg4: memref<128x32xf32, #tpu.memory_space<vmem>>, %arg5: memref<1x32xf32, #tpu.memory_space<vmem>>, %arg6: memref<16x32xf32, #tpu.memory_space<vmem>>) attributes {dimension_semantics = [#tpu.dimension_semantics<parallel>], iteration_bounds = array<i64: 1>, scalar_prefetch = 0 : i64, scratch_operands = 0 : i64, tpu.core_type = #tpu.core_type<tc>, window_params = [{transform_indices = @transform_0, window_bounds = array<i64: 16, 32>}, {pipeline_mode = #tpu.pipeline_mode<synchronous>, transform_indices = @transform_1, window_bounds = array<i64: 32, 128>}, {pipeline_mode = #tpu.pipeline_mode<synchronous>, transform_indices = @transform_2, window_bounds = array<i64: 1, 128>}, {pipeline_mode = #tpu.pipeline_mode<synchronous>, transform_indices = @transform_3, window_bounds = array<i64: 128, 32>}, {pipeline_mode = #tpu.pipeline_mode<synchronous>, transform_indices = @transform_4, window_bounds = array<i64: 1, 32>}, {transform_indices = @transform_5, window_bounds = array<i64: 16, 32>}]} {
    %c0 = arith.constant 0 : index
    %c0_0 = arith.constant 0 : index
    %0 = vector.load %arg1[%c0, %c0_0] : memref<16x32xf32, #tpu.memory_space<vmem>>, vector<16x32xf32>
    %c0_1 = arith.constant 0 : index
    %c0_2 = arith.constant 0 : index
    %1 = vector.load %arg2[%c0_1, %c0_2] : memref<32x128xf32, #tpu.memory_space<vmem>>, vector<32x128xf32>
    %cst = arith.constant dense<0.000000e+00> : vector<16x128xf32>
    %2 = tpu.matmul %0, %1, %cst {dimension_numbers = #tpu.dot_dimension_numbers<[1], [0], [0], [1], [0, 0, 1, 1], [], []>} : vector<16x32xf32>, vector<32x128xf32>, vector<16x128xf32> -> vector<16x128xf32>
    %c0_3 = arith.constant 0 : index
    %c0_4 = arith.constant 0 : index
    %3 = vector.load %arg3[%c0_3, %c0_4] : memref<1x128xf32, #tpu.memory_space<vmem>>, vector<1x128xf32>
    %4 = vector.broadcast %3 : vector<1x128xf32> to vector<16x128xf32>
    %5 = arith.addf %2, %4 : vector<16x128xf32>
    %cst_5 = arith.constant 0.000000e+00 : f32
    %6 = vector.broadcast %cst_5 : f32 to vector<16x128xf32>
    %7 = arith.maximumf %5, %6 : vector<16x128xf32>
    %c0_6 = arith.constant 0 : index
    %c0_7 = arith.constant 0 : index
    %8 = vector.load %arg4[%c0_6, %c0_7] : memref<128x32xf32, #tpu.memory_space<vmem>>, vector<128x32xf32>
    %cst_8 = arith.constant dense<0.000000e+00> : vector<16x32xf32>
    %9 = tpu.matmul %7, %8, %cst_8 {dimension_numbers = #tpu.dot_dimension_numbers<[1], [0], [0], [1], [0, 0, 1, 1], [], []>} : vector<16x128xf32>, vector<128x32xf32>, vector<16x32xf32> -> vector<16x32xf32>
    %c0_9 = arith.constant 0 : index
    %c0_10 = arith.constant 0 : index
    %10 = vector.load %arg5[%c0_9, %c0_10] : memref<1x32xf32, #tpu.memory_space<vmem>>, vector<1x32xf32>
    %11 = vector.broadcast %10 : vector<1x32xf32> to vector<16x32xf32>
    %12 = arith.addf %9, %11 : vector<16x32xf32>
    %c0_11 = arith.constant 0 : index
    %c0_12 = arith.constant 0 : index
    %13 = vector.load %arg6[%c0_11, %c0_12] : memref<16x32xf32, #tpu.memory_space<vmem>>, vector<16x32xf32>
    tpu.vector_store %arg6[%c0_11, %c0_12], %12 {strides = array<i32>} : memref<16x32xf32, #tpu.memory_space<vmem>>, vector<16x32xf32>,
    return
  }
  func.func @transform_0(%arg0: i32) -> (i32, i32) {
    %c0_i32 = arith.constant 0 : i32
    %c0_i32_0 = arith.constant 0 : i32
    return %arg0, %c0_i32 : i32, i32
  }
  func.func @transform_1(%arg0: i32) -> (i32, i32) {
    %c0_i32 = arith.constant 0 : i32
    %c0_i32_0 = arith.constant 0 : i32
    %c0_i32_1 = arith.constant 0 : i32
    return %c0_i32, %c0_i32_0 : i32, i32
  }
  func.func @transform_2(%arg0: i32) -> (i32, i32) {
    %c0_i32 = arith.constant 0 : i32
    %c0_i32_0 = arith.constant 0 : i32
    %c0_i32_1 = arith.constant 0 : i32
    return %c0_i32, %c0_i32_0 : i32, i32
  }
  func.func @transform_3(%arg0: i32) -> (i32, i32) {
    %c0_i32 = arith.constant 0 : i32
    %c0_i32_0 = arith.constant 0 : i32
    %c0_i32_1 = arith.constant 0 : i32
    return %c0_i32, %c0_i32_0 : i32, i32
  }
  func.func @transform_4(%arg0: i32) -> (i32, i32) {
    %c0_i32 = arith.constant 0 : i32
    %c0_i32_0 = arith.constant 0 : i32
    %c0_i32_1 = arith.constant 0 : i32
    return %c0_i32, %c0_i32_0 : i32, i32
  }
  func.func @transform_5(%arg0: i32) -> (i32, i32) {
    %c0_i32 = arith.constant 0 : i32
    %c0_i32_0 = arith.constant 0 : i32
    return %arg0, %c0_i32 : i32, i32
  }
}

</mosaic_0001>

<bundles_post_ra>
// kernel: tpu_custom_call.1
= control target key start
LH: loop header
LB: loop body
LE: loop exit
PB: predicated region body
PF: predicated region fallthrough
CT: control target
= control target key end

     0   :  { %vm34_vm0 = vcmask 261120   ;;  %s496_s0 = inlined_call_operand.vmem [shape: f32[16,32], index: 0, kind: input, shape index: {}]   ;;  %s497_s1 = inlined_call_operand.vmem [shape: f32[32,128], index: 1, kind: input, shape index: {}]   ;;  %s498_s2 = inlined_call_operand.vmem [shape: f32[1,128], index: 2, kind: input, shape index: {}]   ;;  %s499_s3 = inlined_call_operand.vmem [shape: f32[128,32], index: 3, kind: input, shape index: {}]   ;;  %s500_s4 = inlined_call_operand.vmem [shape: f32[1,32], index: 4, kind: input, shape index: {}]   ;;  %s501_s5 = inlined_call_operand.hbm [shape: f32[16,32], index: 5, kind: output, shape index: {}]  }
   0x1   :  { %v23_v0 = vld [vmem:[%s497_s1] sm:$0xff]  ;;  %v24_v1 = vld [vmem:[%s497_s1 + $0x8] sm:$0xff]  ;;  %v25_v2 = vld [vmem:[%s497_s1 + $0x10] sm:$0xff] }
   0x2   :  { %v308_v3 = vpack.c.bf16 %v24_v1, %v23_v0  ;;  %v26_v4 = vld [vmem:[%s497_s1 + $0x18] sm:$0xff]  ;;  %v21_v5 = vld [vmem:[%s496_s0] sm:$0xff]  ;;  %v119_v8 = vld [vmem:[%s499_s3 + $0x8] sm:$0xff] }
   0x3   :  { %v312_v6 = vpack.c.bf16 %v26_v4, %v25_v2  ;;  %270 = vmatprep.mubr.msk.f32.mxu0 %vm34_vm0, %v21_v5  ;;  %v118_v7 = vld [vmem:[%s499_s3] sm:$0xff]  ;;  %v120_v9 = vld [vmem:[%s499_s3 + $0x10] sm:$0xff]  ;;  %v121_v11 = vld [vmem:[%s499_s3 + $0x18] sm:$0xff] }
   0x4   :  { %309 = vmatprep.subr.bf16.mxu0 %v308_v3  ;;  %v316_v10 = vpack.c.bf16 %v119_v8, %v118_v7  ;;  %v320_v12 = vpack.c.bf16 %v121_v11, %v120_v9  ;;  %v122_v13 = vld [vmem:[%s499_s3 + $0x20] sm:$0xff]  ;;  %v123_v14 = vld [vmem:[%s499_s3 + $0x28] sm:$0xff] }
   0x5   :  { %311 = vmatpush3.bf16.msra.mxu0 %v308_v3 }
   0x6   :  { %313 = vmatprep.subr.bf16.mxu0 %v312_v6  ;;  %317 = vmatprep.subr.bf16.mxu1 %v316_v10 }
   0x7   :  { %319 = vmatpush3.bf16.msra.mxu1 %v316_v10 }
   0x8   :  { %10 = vsyncpa [#allocation3], 0  ;;  %321 = vmatprep.subr.bf16.mxu1 %v320_v12  ;;  %v324_v15 = vpack.c.bf16 %v123_v14, %v122_v13  ;;  %v22_v16 = vld [vmem:[%s496_s0 + $0x8] sm:$0xff]  ;;  %v124_v17 = vld [vmem:[%s499_s3 + $0x30] sm:$0xff] }
   0x9   :  { %315 = vmatpush3.bf16.msra.mxu0 %v312_v6  ;;  %v125_v18 = vld [vmem:[%s499_s3 + $0x38] sm:$0xff]  ;;  %v126_v20 = vld [vmem:[%s499_s3 + $0x40] sm:$0xff]  ;;  %v127_v21 = vld [vmem:[%s499_s3 + $0x48] sm:$0xff] }
   0xa   :  { %v328_v19 = vpack.c.bf16 %v125_v18, %v124_v17  ;;  %v332_v22 = vpack.c.bf16 %v127_v21, %v126_v20  ;;  %v128_v23 = vld [vmem:[%s499_s3 + $0x50] sm:$0xff]  ;;  %v129_v24 = vld [vmem:[%s499_s3 + $0x58] sm:$0xff]  ;;  %v130_v26 = vld [vmem:[%s499_s3 + $0x60] sm:$0xff] }
   0xb   :  { %323 = vmatpush3.bf16.msra.mxu1 %v320_v12  ;;  %v336_v25 = vpack.c.bf16 %v129_v24, %v128_v23  ;;  %v131_v27 = vld [vmem:[%s499_s3 + $0x68] sm:$0xff]  ;;  %v132_v29 = vld [vmem:[%s499_s3 + $0x70] sm:$0xff]  ;;  %v133_v30 = vld [vmem:[%s499_s3 + $0x78] sm:$0xff]  ;;  %s375_s3 = smov [#allocation2]  }
   0xc   :  { %271 = vmatmul.mubr.msk.f32.vlgmr.msra.gmra.mrb[0].mxu0 %vm34_vm0, %v22_v16  ;;  %325 = vmatprep.subr.bf16.mxu1 %v324_v15  ;;  %v340_v28 = vpack.c.bf16 %v131_v27, %v130_v26  ;;  %v344_v31 = vpack.c.bf16 %v133_v30, %v132_v29  ;;  %v234_v32 = vld [vmem:[%s498_s2] ss:$0 sm:$0xff]  ;;  %s223_s13 = sshll.u32 %s375_s3, 4  ;;  %s224_s13 = int_to_ptr.vmem [resolvable:$true] %s223_s13 }
   0xd   :  { %v237_v39 = vld [vmem:[%s500_s4] ss:$0 sm:$0xff]  ;;  %s351_s2 = scalar_lea.vmem %s224_s13, 256  ;;  %p356_p1 = scmp.lt.s32.totalorder %s224_s13, %s224_s13 }
   0xe   :  { %p352_p0 = scmp.ne.s32.totalorder %s224_s13, %s351_s2  ;;  %p357_p2 = scmp.lt.s32.totalorder %s351_s2, %s351_s2 }
   0xf   :  { %327 = vmatpush3.bf16.msra.mxu1 %v324_v15 }
  0x10   :  { %329 = vmatprep.subr.bf16.mxu1 %v328_v19  ;;  %p358_p3 = por %p357_p2, %p356_p1 }
  0x12   :  { %p359_p4 = pnand %p358_p3, %p352_p0 }
  0x13   :  { %331 = vmatpush3.bf16.msra.mxu1 %v328_v19 }
  0x14   :  { %333 = vmatprep.subr.bf16.mxu1 %v332_v22 }
  0x17   :  { %335 = vmatpush3.bf16.msra.mxu1 %v332_v22 }
  0x18   :  { %337 = vmatprep.subr.bf16.mxu1 %v336_v25 }
  0x1b   :  { %339 = vmatpush3.bf16.msra.mxu1 %v336_v25 }
  0x1c   :  { %341 = vmatprep.subr.bf16.mxu1 %v340_v28 }
  0x1f   :  { %343 = vmatpush3.bf16.msra.mxu1 %v340_v28 }
  0x20   :  { %345 = vmatprep.subr.bf16.mxu1 %v344_v31 }
  0x23   :  { %347 = vmatpush3.bf16.msra.mxu1 %v344_v31 }
  0xdf   :  { %v272_v33 = vpop.f32.mrb[0].mxu0 }
  0xe0   :  { %v113_v34 = vadd.f32 %v272_v33, %v234_v32  ;;  %v107_v35 = vpop.f32.mrb[1].mxu0 }
  0xe1   :  { %v108_v36 = vadd.f32 %v234_v32, %v107_v35 }
  0xe2   :  { %v117_v38 = vmax.f32 %v113_v34, 0.0 }
  0xe3   :  { %v116_v37 = vmax.f32 %v108_v36, 0.0 }
  0xe5   :  { %305 = vmatprep.mubr.f32.mxu1 %v116_v37 }
  0xe6   :  { %306 = vmatmul.mubr.f32.vlgmr.msra.gmra.mrb[0].mxu1 %v117_v38 }
 0x1b9   :  { %v307_v40 = vpop.f32.mrb[0].mxu1 }
 0x1ba   :  { %v213_v41 = vadd.f32 %v307_v40, %v237_v39  ;;  %v207_v42 = vpop.f32.mrb[1].mxu1 }
 0x1bb   :  { %v208_v43 = vadd.f32 %v237_v39, %v207_v42 }
 0x1bc   :  { %217 = vst.msk [vmem:[#allocation2 + $0x8] sm:$0xff] %vm34_vm0, %v213_v41 }
 0x1bd   :  { %216 = vst.msk [vmem:[#allocation2] sm:$0xff] %vm34_vm0, %v208_v43 }
 0x1be   :  { %362 = shalt.err (!%p359_p4)
}
 0x1bf   :  { %s363_s15 = scalar_lea.hbm %s501_s5, 256 }
 0x1c0   :  { %p364_p5 = scmp.ne.s32.totalorder %s501_s5, %s363_s15  ;;  %p367_p6 = scmp.lt.u32.totalorder %s363_s15, %s501_s5 }
 0x1c2   :  { %p369_p7 = pnand %p367_p6, %p364_p5 }
 0x1c4   :  { %372 = shalt.err (!%p369_p7)
}
 0x1c5   :  { %s376_s20 = smov 128   ;;  %s377_s21 = smov 8  }
 0x1c6   :  { %229 = dma.vmem_to_hbm [thread:$0]  %s224_s13, 256, %s501_s5, [#allocation3], %s376_s20, %s376_s20, %s377_s21  }
 0x1c7   :  { %373 = dma.done.wait [#allocation3], 256  }
 0x1c8   :  { %374 = vsyncadd [#allocation3], 4294967040 }
 0x1c9   :  { %233 = vsyncpa [#allocation3], 1 }

</bundles_post_ra>
